<compile_context>
chip_gen: v6e
topology: v6e:2x2x1
jax: 0.10.0
libtpu: 0.0.40
codegen_flags: <defaults>
</compile_context>

<pallas_src>
import functools

import jax
import jax.numpy as jnp
from jax import lax
from jax.experimental import pallas as pl
from jax.experimental.pallas import tpu as pltpu


# --------------------------------------------------------------------------- #
# Pass 1: accumulate scores + row sums-of-squares over HW tiles                #
# --------------------------------------------------------------------------- #
def _stats_kernel(inp_ref, col_ref, wq_ref, wk_ref, bq_ref, bk_ref,
                  s_ref, qss_ref, kss_ref,
                  *, hw, hw_tile, mxu_dtype, mask_pad):
    """Grid (B, n_shards, n_t_shard): (parallel, parallel, arbitrary)."""
    t = pl.program_id(2)

    @pl.when(t == 0)
    def _init():
        s_ref[...] = jnp.zeros_like(s_ref)
        qss_ref[...] = jnp.zeros_like(qss_ref)
        kss_ref[...] = jnp.zeros_like(kss_ref)

    x = inp_ref[0]        # (C, hw_tile), already mxu_dtype (host pre-cast)
    col = col_ref[0]      # (C, hw_tile)

    # 1x1 convs == channel matmuls (q from `color`, k from `input`); f32 accum,
    # f32 biases.  Weights are already in the MXU dtype -> no per-step cast.
    q = jnp.dot(wq_ref[...], col, preferred_element_type=jnp.float32) + bq_ref[...]
    k = jnp.dot(wk_ref[...], x, preferred_element_type=jnp.float32) + bk_ref[...]

    if mask_pad:
        # Zero padded lanes: the bias makes them nonzero otherwise.
        base = (pl.program_id(1) * pl.num_programs(2) + t) * hw_tile
        lane = lax.broadcasted_iota(jnp.int32, q.shape, dimension=1)
        valid = (base + lane) < hw
        q = jnp.where(valid, q, 0.0)
        k = jnp.where(valid, k, 0.0)

    # Deferred-normalize statistics (VPU + XLU, hidden under the MXU).
    qss_ref[0, 0] += jnp.sum(q * q, axis=-1, keepdims=True)   # (C, 1)
    kss_ref[0, 0] += jnp.sum(k * k, axis=-1, keepdims=True)   # (C, 1)

    # ONE full-width (C, tile) @ (tile, C) score matmul (full MXU M/N
    # occupancy); only the per-head block-diagonal blocks are consumed later.
    s_ref[0, 0] += lax.dot_general(
        q.astype(mxu_dtype), k.astype(mxu_dtype),
        (((1,), (1,)), ((), ())),
        preferred_element_type=jnp.float32)


# --------------------------------------------------------------------------- #
# Finalize (plain XLA, tiny): softmax + fold Wv/bv/Wo/bo into (M, c)           #
# --------------------------------------------------------------------------- #
def _finalize_fold(s, qss, kss, wv, wo, bv, bo, num_heads, m_dtype):
    """s: (B,C,C) unnormalized scores; qss/kss: (B,C,1).  Returns (M, c)."""
    b, c, _ = s.shape
    ch = c // num_heads
    eps = jnp.float32(1e-12)
    # 1 / max(||row||, eps) == rsqrt(max(sumsq, eps^2))
    q_inv = lax.rsqrt(jnp.maximum(qss, eps * eps))             # (B, C, 1)
    k_inv = lax.rsqrt(jnp.maximum(kss, eps * eps))

    # Per-head block-diagonal score blocks, rescaled by outer(q_inv, k_inv).
    s_blocks = jnp.stack(
        [s[:, h * ch:(h + 1) * ch, h * ch:(h + 1) * ch] for h in range(num_heads)],
        axis=1)                                                # (B, H, ch, ch)
    qn = q_inv.reshape(b, num_heads, ch, 1)
    kn = k_inv.reshape(b, num_heads, ch, 1)
    attn = s_blocks * qn * jnp.swapaxes(kn, -1, -2)
    attn = jax.nn.softmax(attn, axis=-1)                       # exact softmax

    # Fold project_out and v-projection through the attention matrices:
    #   y = sum_h Wo[:,h] @ attn_h @ (Wv[h,:] @ x + bv[h]) + bo = M @ x + c
    wo_h = wo.reshape(c, num_heads, ch)                        # Wo[:, h-block]
    wv_h = wv.reshape(num_heads, ch, c)                        # Wv[h-block, :]
    bv_h = bv.reshape(num_heads, ch)

    t1 = jnp.einsum("chd,bhde->bhce", wo_h, attn)              # (B, H, C, ch)
    m = jnp.einsum("bhce,hef->bcf", t1, wv_h)                  # (B, C, C)
    cv = jnp.einsum("bhce,he->bc", t1, bv_h) + bo.reshape(1, c)
    return m.astype(m_dtype), cv.reshape(b, c, 1).astype(jnp.float32)


# --------------------------------------------------------------------------- #
# Pass 2: stream HW tiles, y_tile = M_b @ x_tile + c_b                         #
# --------------------------------------------------------------------------- #
def _apply_kernel(m_ref, cvec_ref, inp_ref, out_ref):
    # M is already in the MXU dtype (emitted that way from finalize).
    y = jnp.dot(m_ref[0], inp_ref[0],
                preferred_element_type=jnp.float32) + cvec_ref[0]
    out_ref[0] = y.astype(out_ref.dtype)


# --------------------------------------------------------------------------- #
# Host-side wrapper                                                            #
# --------------------------------------------------------------------------- #
def _round_up(x, m):
    return ((x + m - 1) // m) * m


def _device_vmem_capacity():
    try:
        return pltpu.get_tpu_info().vmem_capacity_bytes
    except Exception:
        return 128 * 1024 * 1024


def _pick_tiling(c, hw, in_bytes, vmem_cap, hw_tile=None):
    """Return (hw_tile, n_t, hw_pad); tile sized from C and VMEM capacity."""
    hw128 = _round_up(max(hw, 1), 128)
    if hw_tile is None:
        # Per-lane VMEM per pass-1 grid step:
        #   2 input streams, double-buffered, mxu_dtype -> 4*in_bytes * C
        #   q, k f32 temporaries                        -> 8 * C
        #   mxu-dtype q/k copies for the score matmul   -> 2*in_bytes * C
        #   misc temporaries / headroom                 -> 8 * C
        per_lane = c * (6 * in_bytes + 16)
        budget = int(vmem_cap * 0.55)
        target = max(512, min(16384, (budget // max(per_lane, 1)) // 128 * 128))
        if hw128 <= target:
            hw_tile = hw128
        else:
            n_t = -(-hw128 // target)
            hw_tile = _round_up(-(-hw128 // n_t), 128)   # <=128 lanes/tile waste
    else:
        hw_tile = min(_round_up(hw_tile, 128), hw128)
    n_t = -(-hw // hw_tile)
    return hw_tile, n_t, n_t * hw_tile


def color_attention(inp, color, params, num_heads, *,
                    mxu_dtype=jnp.bfloat16, hw_tile=None):
    """inp, color: (B, C, H, W) float32.  Returns (B, C, H, W) float32."""
    b, c, h, w = inp.shape
    assert c % num_heads == 0
    hw = h * w
    in_bytes = jnp.dtype(mxu_dtype).itemsize

    cap = _device_vmem_capacity()
    vmem_limit = int(cap * 3 // 4)
    hw_tile, n_t, hw_pad = _pick_tiling(c, hw, in_bytes, cap, hw_tile)
    mask_pad = hw_pad != hw

    # B==1: shard the HW reduction across both TensorCores (v7x megacore).
    n_shards = 2 if (b == 1 and n_t >= 2 and n_t % 2 == 0) else 1
    n_t_shard = n_t // n_shards

    # bf16 activations + weights halve the dominant HBM streams (f32 accum).
    inp_f = inp.reshape(b, c, hw).astype(mxu_dtype)
    col_f = color.reshape(b, c, hw).astype(mxu_dtype)
    if mask_pad:
        pad = ((0, 0), (0, 0), (0, hw_pad - hw))
        inp_f = jnp.pad(inp_f, pad)
        col_f = jnp.pad(col_f, pad)

    wq = params["wq"].astype(mxu_dtype)        # pre-cast once on the host
    wk = params["wk"].astype(mxu_dtype)
    bq = params["bq"].reshape(c, 1).astype(jnp.float32)
    bk = params["bk"].reshape(c, 1).astype(jnp.float32)

    tile_spec3 = pl.BlockSpec((1, c, hw_tile),
                              lambda i, s, t: (i, 0, s * n_t_shard + t))
    w_spec = pl.BlockSpec((c, c), lambda i, s, t: (0, 0))
    b_spec = pl.BlockSpec((c, 1), lambda i, s, t: (0, 0))
    s_spec = pl.BlockSpec((1, 1, c, c), lambda i, s, t: (i, s, 0, 0))
    ss_spec = pl.BlockSpec((1, 1, c, 1), lambda i, s, t: (i, s, 0, 0))

    stats_cost = pl.CostEstimate(
        flops=int(6 * b * hw_pad * c * c),
        transcendentals=0,
        bytes_accessed=int(2 * b * c * hw_pad * in_bytes
                           + 2 * c * c * in_bytes + 2 * c * 4
                           + b * n_shards * (c * c + 2 * c) * 4),
    )

    s_part, qss_part, kss_part = pl.pallas_call(
        functools.partial(_stats_kernel, hw=hw, hw_tile=hw_tile,
                          mxu_dtype=mxu_dtype, mask_pad=mask_pad),
        out_shape=(jax.ShapeDtypeStruct((b, n_shards, c, c), jnp.float32),
                   jax.ShapeDtypeStruct((b, n_shards, c, 1), jnp.float32),
                   jax.ShapeDtypeStruct((b, n_shards, c, 1), jnp.float32)),
        grid_spec=pltpu.PrefetchScalarGridSpec(
            num_scalar_prefetch=0,
            grid=(b, n_shards, n_t_shard),
            in_specs=[tile_spec3, tile_spec3, w_spec, w_spec, b_spec, b_spec],
            out_specs=[s_spec, ss_spec, ss_spec]),
        compiler_params=pltpu.CompilerParams(
            dimension_semantics=("parallel", "parallel", "arbitrary"),
            vmem_limit_bytes=vmem_limit),
        cost_estimate=stats_cost,
    )(inp_f, col_f, wq, wk, bq, bk)

    # Tiny per-batch finalize in plain XLA; M emitted directly in mxu_dtype.
    m_mat, c_vec = _finalize_fold(
        s_part.sum(axis=1), qss_part.sum(axis=1), kss_part.sum(axis=1),
        params["wv"], params["wo"], params["bv"], params["bo"],
        num_heads, mxu_dtype)

    tile_spec2 = pl.BlockSpec((1, c, hw_tile), lambda i, t: (i, 0, t))
    m_spec = pl.BlockSpec((1, c, c), lambda i, t: (i, 0, 0))
    cv_spec = pl.BlockSpec((1, c, 1), lambda i, t: (i, 0, 0))

    apply_cost = pl.CostEstimate(
        flops=int(2 * b * c * c * hw_pad),
        transcendentals=0,
        bytes_accessed=int(b * c * hw_pad * (in_bytes + 4)
                           + b * (c * c * in_bytes + c * 4)),
    )

    out = pl.pallas_call(
        _apply_kernel,
        out_shape=jax.ShapeDtypeStruct((b, c, hw_pad), jnp.float32),
        grid_spec=pltpu.PrefetchScalarGridSpec(
            num_scalar_prefetch=0,
            grid=(b, n_t),
            in_specs=[m_spec, cv_spec, tile_spec2],
            out_specs=tile_spec2),
        compiler_params=pltpu.CompilerParams(
            # Both axes independent in pass 2 -> both parallel.
            dimension_semantics=("parallel", "parallel"),
            vmem_limit_bytes=vmem_limit),
        cost_estimate=apply_cost,
    )(m_mat, c_vec, inp_f)

    if mask_pad:
        out = out[:, :, :hw]
    return out.reshape(b, c, h, w)


# --------------------------------------------------------------------------- #
# Pure-JAX reference mirroring the PyTorch forward                             #
# --------------------------------------------------------------------------- #
def color_attention_ref(inp, color, params, num_heads):
    b, c, h, w = inp.shape
    hw = h * w
    ch = c // num_heads
    xi = inp.reshape(b, c, hw)
    xc = color.reshape(b, c, hw)

    def conv1x1(wt, bias, x):
        return jnp.einsum("oc,bci->boi", wt, x) + bias[None, :, None]

    q = conv1x1(params["wq"], params["bq"], xc)
    k = conv1x1(params["wk"], params["bk"], xi)
    v = conv1x1(params["wv"], params["bv"], xi)

    def to_heads(t):
        return t.reshape(b, num_heads, ch, hw)

    q, k, v = to_heads(q), to_heads(k), to_heads(v)
    q = q / jnp.maximum(jnp.linalg.norm(q, axis=-1, keepdims=True), 1e-12)
    k = k / jnp.maximum(jnp.linalg.norm(k, axis=-1, keepdims=True), 1e-12)
    attn = jnp.einsum("bhcn,bhdn->bhcd", q, k)
    attn = jax.nn.softmax(attn, axis=-1)
    out = jnp.einsum("bhcd,bhdn->bhcn", attn, v)
    out = out.reshape(b, c, hw)
    out = conv1x1(params["wo"], params["bo"], out)
    return out.reshape(b, c, h, w)


def init_params(key, dim):
    ks = jax.random.split(key, 8)
    scale = 0.1
    return {
        "wq": scale * jax.random.normal(ks[0], (dim, dim), jnp.float32),
        "wk": scale * jax.random.normal(ks[1], (dim, dim), jnp.float32),
        "wv": scale * jax.random.normal(ks[2], (dim, dim), jnp.float32),
        "wo": scale * jax.random.normal(ks[3], (dim, dim), jnp.float32),
        "bq": scale * jax.random.normal(ks[4], (dim,), jnp.float32),
        "bk": scale * jax.random.normal(ks[5], (dim,), jnp.float32),
        "bv": scale * jax.random.normal(ks[6], (dim,), jnp.float32),
        "bo": scale * jax.random.normal(ks[7], (dim,), jnp.float32),
    }


if __name__ == "__main__":
    key = jax.random.PRNGKey(0)

    # Case 1: multi-tile HW reduction, f32 MXU path, B=2, 128-aligned HW.
    B, C, H, W, HEADS = 2, 4, 16, 16, 2
    k_in, k_col, k_par, key = jax.random.split(key, 4)
    inp = jax.random.normal(k_in, (B, C, H, W), jnp.float32)
    color = jax.random.normal(k_col, (B, C, H, W), jnp.float32)
    params = init_params(k_par, C)
    ref = color_attention_ref(inp, color, params, HEADS)
    out = jax.block_until_ready(
        color_attention(inp, color, params, HEADS,
                        mxu_dtype=jnp.float32, hw_tile=128))
    assert out.shape == (B, C, H, W)
    assert jnp.allclose(out, ref, atol=2e-3, rtol=2e-3), "case 1 (f32) mismatch"

    # Case 2: default bf16 MXU-operand path, auto tile selection.
    # NOTE: bf16 q/k before the deferred normalize is a deliberate
    # traffic/accuracy trade-off; hence the looser tolerance.
    out = jax.block_until_ready(color_attention(inp, color, params, HEADS))
    assert jnp.allclose(out, ref, atol=3e-2, rtol=3e-2), "case 2 (bf16) mismatch"

    # Case 3: B=1 (two-TC reduction shard) + non-128-aligned HW (pad + mask).
    B, C, H, W, HEADS = 1, 8, 15, 15, 2
    k_in, k_col, k_par, key = jax.random.split(key, 4)
    inp = jax.random.normal(k_in, (B, C, H, W), jnp.float32)
    color = jax.random.normal(k_col, (B, C, H, W), jnp.float32)
    params = init_params(k_par, C)
    ref = color_attention_ref(inp, color, params, HEADS)
    out = jax.block_until_ready(
        color_attention(inp, color, params, HEADS,
                        mxu_dtype=jnp.float32, hw_tile=128))
    assert out.shape == (B, C, H, W)
    assert jnp.allclose(out, ref, atol=2e-3, rtol=2e-3), "case 3 (pad/shard) mismatch"

    print("KERNEL_OK")
</pallas_src>

<mosaic_0001>
module attributes {stable_mosaic.version = 11 : i64} {
  func.func @_stats_kernel(%arg0: i32, %arg1: i32, %arg2: i32, %arg3: memref<1x4x128xf32, #tpu.memory_space<vmem>>, %arg4: memref<1x4x128xf32, #tpu.memory_space<vmem>>, %arg5: memref<4x4xf32, #tpu.memory_space<vmem>>, %arg6: memref<4x4xf32, #tpu.memory_space<vmem>>, %arg7: memref<4x1xf32, #tpu.memory_space<vmem>>, %arg8: memref<4x1xf32, #tpu.memory_space<vmem>>, %arg9: memref<1x1x4x4xf32, #tpu.memory_space<vmem>>, %arg10: memref<1x1x4x1xf32, #tpu.memory_space<vmem>>, %arg11: memref<1x1x4x1xf32, #tpu.memory_space<vmem>>) attributes {dimension_semantics = [#tpu.dimension_semantics<parallel>, #tpu.dimension_semantics<parallel>, #tpu.dimension_semantics<arbitrary>], iteration_bounds = array<i64: 2, 1, 2>, scalar_prefetch = 0 : i64, scratch_operands = 0 : i64, tpu.core_type = #tpu.core_type<tc>, window_params = [{transform_indices = @transform_0, window_bounds = array<i64: 1, 4, 128>}, {transform_indices = @transform_1, window_bounds = array<i64: 1, 4, 128>}, {pipeline_mode = #tpu.pipeline_mode<synchronous>, transform_indices = @transform_2, window_bounds = array<i64: 4, 4>}, {pipeline_mode = #tpu.pipeline_mode<synchronous>, transform_indices = @transform_3, window_bounds = array<i64: 4, 4>}, {pipeline_mode = #tpu.pipeline_mode<synchronous>, transform_indices = @transform_4, window_bounds = array<i64: 4, 1>}, {pipeline_mode = #tpu.pipeline_mode<synchronous>, transform_indices = @transform_5, window_bounds = array<i64: 4, 1>}, {transform_indices = @transform_6, window_bounds = array<i64: 1, 1, 4, 4>}, {transform_indices = @transform_7, window_bounds = array<i64: 1, 1, 4, 1>}, {transform_indices = @transform_8, window_bounds = array<i64: 1, 1, 4, 1>}]} {
    %c0_i32 = arith.constant 0 : i32
    %0 = arith.cmpi eq, %arg2, %c0_i32 : i32
    %1 = arith.extui %0 : i1 to i32
    %c0_i32_0 = arith.constant 0 : i32
    %2 = arith.cmpi ne, %1, %c0_i32_0 : i32
    scf.if %2 {
      %cst_42 = arith.constant 0.000000e+00 : f32
      %42 = vector.broadcast %cst_42 : f32 to vector<1x1x4x4xf32>
      %c0_43 = arith.constant 0 : index
      %c0_44 = arith.constant 0 : index
      %c0_45 = arith.constant 0 : index
      %c0_46 = arith.constant 0 : index
      %43 = vector.load %arg9[%c0_43, %c0_44, %c0_45, %c0_46] : memref<1x1x4x4xf32, #tpu.memory_space<vmem>>, vector<1x1x4x4xf32>
      tpu.vector_store %arg9[%c0_43, %c0_44, %c0_45, %c0_46], %42 {strides = array<i32>} : memref<1x1x4x4xf32, #tpu.memory_space<vmem>>, vector<1x1x4x4xf32>,
      %cst_47 = arith.constant 0.000000e+00 : f32
      %44 = vector.broadcast %cst_47 : f32 to vector<1x1x4x1xf32>
      %c0_48 = arith.constant 0 : index
      %c0_49 = arith.constant 0 : index
      %c0_50 = arith.constant 0 : index
      %c0_51 = arith.constant 0 : index
      %45 = vector.load %arg10[%c0_48, %c0_49, %c0_50, %c0_51] : memref<1x1x4x1xf32, #tpu.memory_space<vmem>>, vector<1x1x4x1xf32>
      tpu.vector_store %arg10[%c0_48, %c0_49, %c0_50, %c0_51], %44 {strides = array<i32>} : memref<1x1x4x1xf32, #tpu.memory_space<vmem>>, vector<1x1x4x1xf32>,
      %cst_52 = arith.constant 0.000000e+00 : f32
      %46 = vector.broadcast %cst_52 : f32 to vector<1x1x4x1xf32>
      %c0_53 = arith.constant 0 : index
      %c0_54 = arith.constant 0 : index
      %c0_55 = arith.constant 0 : index
      %c0_56 = arith.constant 0 : index
      %47 = vector.load %arg11[%c0_53, %c0_54, %c0_55, %c0_56] : memref<1x1x4x1xf32, #tpu.memory_space<vmem>>, vector<1x1x4x1xf32>
      tpu.vector_store %arg11[%c0_53, %c0_54, %c0_55, %c0_56], %46 {strides = array<i32>} : memref<1x1x4x1xf32, #tpu.memory_space<vmem>>, vector<1x1x4x1xf32>,
    } else {
    }
    %c0 = arith.constant 0 : index
    %c0_1 = arith.constant 0 : index
    %c0_2 = arith.constant 0 : index
    %3 = vector.load %arg3[%c0, %c0_1, %c0_2] : memref<1x4x128xf32, #tpu.memory_space<vmem>>, vector<1x4x128xf32>
    %4 = vector.shape_cast %3 : vector<1x4x128xf32> to vector<4x128xf32>
    %c0_3 = arith.constant 0 : index
    %c0_4 = arith.constant 0 : index
    %c0_5 = arith.constant 0 : index
    %5 = vector.load %arg4[%c0_3, %c0_4, %c0_5] : memref<1x4x128xf32, #tpu.memory_space<vmem>>, vector<1x4x128xf32>
    %6 = vector.shape_cast %5 : vector<1x4x128xf32> to vector<4x128xf32>
    %c0_6 = arith.constant 0 : index
    %c0_7 = arith.constant 0 : index
    %7 = vector.load %arg5[%c0_6, %c0_7] : memref<4x4xf32, #tpu.memory_space<vmem>>, vector<4x4xf32>
    %cst = arith.constant dense<0.000000e+00> : vector<4x128xf32>
    %8 = tpu.matmul %7, %6, %cst {dimension_numbers = #tpu.dot_dimension_numbers<[1], [0], [0], [1], [0, 0, 1, 1], [], []>} : vector<4x4xf32>, vector<4x128xf32>, vector<4x128xf32> -> vector<4x128xf32>
    %c0_8 = arith.constant 0 : index
    %c0_9 = arith.constant 0 : index
    %9 = vector.load %arg7[%c0_8, %c0_9] : memref<4x1xf32, #tpu.memory_space<vmem>>, vector<4x1xf32>
    %10 = vector.broadcast %9 : vector<4x1xf32> to vector<4x128xf32>
    %11 = arith.addf %8, %10 : vector<4x128xf32>
    %c0_10 = arith.constant 0 : index
    %c0_11 = arith.constant 0 : index
    %12 = vector.load %arg6[%c0_10, %c0_11] : memref<4x4xf32, #tpu.memory_space<vmem>>, vector<4x4xf32>
    %cst_12 = arith.constant dense<0.000000e+00> : vector<4x128xf32>
    %13 = tpu.matmul %12, %4, %cst_12 {dimension_numbers = #tpu.dot_dimension_numbers<[1], [0], [0], [1], [0, 0, 1, 1], [], []>} : vector<4x4xf32>, vector<4x128xf32>, vector<4x128xf32> -> vector<4x128xf32>
    %c0_13 = arith.constant 0 : index
    %c0_14 = arith.constant 0 : index
    %14 = vector.load %arg8[%c0_13, %c0_14] : memref<4x1xf32, #tpu.memory_space<vmem>>, vector<4x1xf32>
    %15 = vector.broadcast %14 : vector<4x1xf32> to vector<4x128xf32>
    %16 = arith.addf %13, %15 : vector<4x128xf32>
    %c0_15 = arith.constant 0 : index
    %c0_16 = arith.constant 0 : index
    %c0_17 = arith.constant 0 : index
    %c0_18 = arith.constant 0 : index
    %17 = vector.load %arg10[%c0_15, %c0_16, %c0_17, %c0_18] : memref<1x1x4x1xf32, #tpu.memory_space<vmem>>, vector<1x1x4x1xf32>
    %18 = vector.shape_cast %17 : vector<1x1x4x1xf32> to vector<4x1xf32>
    %19 = arith.mulf %11, %11 : vector<4x128xf32>
    %cst_19 = arith.constant dense<0.000000e+00> : vector<4xf32>
    %20 = vector.multi_reduction <add>, %19, %cst_19 [1] : vector<4x128xf32> to vector<4xf32>
    %21 = vector.shape_cast %20 : vector<4xf32> to vector<4x1xf32>
    %22 = arith.addf %18, %21 : vector<4x1xf32>
    %c0_20 = arith.constant 0 : index
    %c0_21 = arith.constant 0 : index
    %c0_22 = arith.constant 0 : index
    %c0_23 = arith.constant 0 : index
    %23 = vector.load %arg10[%c0_20, %c0_21, %c0_22, %c0_23] : memref<1x1x4x1xf32, #tpu.memory_space<vmem>>, vector<1x1x4x1xf32>
    %24 = vector.shape_cast %23 : vector<1x1x4x1xf32> to vector<4x1xf32>
    %25 = vector.shape_cast %22 : vector<4x1xf32> to vector<1x1x4x1xf32>
    tpu.vector_store %arg10[%c0_20, %c0_21, %c0_22, %c0_23], %25 {strides = array<i32>} : memref<1x1x4x1xf32, #tpu.memory_space<vmem>>, vector<1x1x4x1xf32>,
    %c0_24 = arith.constant 0 : index
    %c0_25 = arith.constant 0 : index
    %c0_26 = arith.constant 0 : index
    %c0_27 = arith.constant 0 : index
    %26 = vector.load %arg11[%c0_24, %c0_25, %c0_26, %c0_27] : memref<1x1x4x1xf32, #tpu.memory_space<vmem>>, vector<1x1x4x1xf32>
    %27 = vector.shape_cast %26 : vector<1x1x4x1xf32> to vector<4x1xf32>
    %28 = arith.mulf %16, %16 : vector<4x128xf32>
    %cst_28 = arith.constant dense<0.000000e+00> : vector<4xf32>
    %29 = vector.multi_reduction <add>, %28, %cst_28 [1] : vector<4x128xf32> to vector<4xf32>
    %30 = vector.shape_cast %29 : vector<4xf32> to vector<4x1xf32>
    %31 = arith.addf %27, %30 : vector<4x1xf32>
    %c0_29 = arith.constant 0 : index
    %c0_30 = arith.constant 0 : index
    %c0_31 = arith.constant 0 : index
    %c0_32 = arith.constant 0 : index
    %32 = vector.load %arg11[%c0_29, %c0_30, %c0_31, %c0_32] : memref<1x1x4x1xf32, #tpu.memory_space<vmem>>, vector<1x1x4x1xf32>
    %33 = vector.shape_cast %32 : vector<1x1x4x1xf32> to vector<4x1xf32>
    %34 = vector.shape_cast %31 : vector<4x1xf32> to vector<1x1x4x1xf32>
    tpu.vector_store %arg11[%c0_29, %c0_30, %c0_31, %c0_32], %34 {strides = array<i32>} : memref<1x1x4x1xf32, #tpu.memory_space<vmem>>, vector<1x1x4x1xf32>,
    %c0_33 = arith.constant 0 : index
    %c0_34 = arith.constant 0 : index
    %c0_35 = arith.constant 0 : index
    %c0_36 = arith.constant 0 : index
    %35 = vector.load %arg9[%c0_33, %c0_34, %c0_35, %c0_36] : memref<1x1x4x4xf32, #tpu.memory_space<vmem>>, vector<1x1x4x4xf32>
    %36 = vector.shape_cast %35 : vector<1x1x4x4xf32> to vector<4x4xf32>
    %cst_37 = arith.constant dense<0.000000e+00> : vector<4x4xf32>
    %37 = tpu.matmul %11, %16, %cst_37 {dimension_numbers = #tpu.dot_dimension_numbers<[1], [1], [0], [0], [0, 0, 1, 0], [], []>} : vector<4x128xf32>, vector<4x128xf32>, vector<4x4xf32> -> vector<4x4xf32>
    %38 = arith.addf %36, %37 : vector<4x4xf32>
    %c0_38 = arith.constant 0 : index
    %c0_39 = arith.constant 0 : index
    %c0_40 = arith.constant 0 : index
    %c0_41 = arith.constant 0 : index
    %39 = vector.load %arg9[%c0_38, %c0_39, %c0_40, %c0_41] : memref<1x1x4x4xf32, #tpu.memory_space<vmem>>, vector<1x1x4x4xf32>
    %40 = vector.shape_cast %39 : vector<1x1x4x4xf32> to vector<4x4xf32>
    %41 = vector.shape_cast %38 : vector<4x4xf32> to vector<1x1x4x4xf32>
    tpu.vector_store %arg9[%c0_38, %c0_39, %c0_40, %c0_41], %41 {strides = array<i32>} : memref<1x1x4x4xf32, #tpu.memory_space<vmem>>, vector<1x1x4x4xf32>,
    return
  }
  func.func @transform_0(%arg0: i32, %arg1: i32, %arg2: i32) -> (i32, i32, i32) {
    %c2_i32 = arith.constant 2 : i32
    %0 = arith.muli %arg1, %c2_i32 : i32
    %1 = arith.addi %0, %arg2 : i32
    %c0_i32 = arith.constant 0 : i32
    %c0_i32_0 = arith.constant 0 : i32
    return %arg0, %c0_i32, %1 : i32, i32, i32
  }
  func.func @transform_1(%arg0: i32, %arg1: i32, %arg2: i32) -> (i32, i32, i32) {
    %c2_i32 = arith.constant 2 : i32
    %0 = arith.muli %arg1, %c2_i32 : i32
    %1 = arith.addi %0, %arg2 : i32
    %c0_i32 = arith.constant 0 : i32
    %c0_i32_0 = arith.constant 0 : i32
    return %arg0, %c0_i32, %1 : i32, i32, i32
  }
  func.func @transform_2(%arg0: i32, %arg1: i32, %arg2: i32) -> (i32, i32) {
    %c0_i32 = arith.constant 0 : i32
    %c0_i32_0 = arith.constant 0 : i32
    %c0_i32_1 = arith.constant 0 : i32
    return %c0_i32, %c0_i32_0 : i32, i32
  }
  func.func @transform_3(%arg0: i32, %arg1: i32, %arg2: i32) -> (i32, i32) {
    %c0_i32 = arith.constant 0 : i32
    %c0_i32_0 = arith.constant 0 : i32
    %c0_i32_1 = arith.constant 0 : i32
    return %c0_i32, %c0_i32_0 : i32, i32
  }
  func.func @transform_4(%arg0: i32, %arg1: i32, %arg2: i32) -> (i32, i32) {
    %c0_i32 = arith.constant 0 : i32
    %c0_i32_0 = arith.constant 0 : i32
    %c0_i32_1 = arith.constant 0 : i32
    return %c0_i32, %c0_i32_0 : i32, i32
  }
  func.func @transform_5(%arg0: i32, %arg1: i32, %arg2: i32) -> (i32, i32) {
    %c0_i32 = arith.constant 0 : i32
    %c0_i32_0 = arith.constant 0 : i32
    %c0_i32_1 = arith.constant 0 : i32
    return %c0_i32, %c0_i32_0 : i32, i32
  }
  func.func @transform_6(%arg0: i32, %arg1: i32, %arg2: i32) -> (i32, i32, i32, i32) {
    %c0_i32 = arith.constant 0 : i32
    %c0_i32_0 = arith.constant 0 : i32
    %c0_i32_1 = arith.constant 0 : i32
    return %arg0, %arg1, %c0_i32, %c0_i32_0 : i32, i32, i32, i32
  }
  func.func @transform_7(%arg0: i32, %arg1: i32, %arg2: i32) -> (i32, i32, i32, i32) {
    %c0_i32 = arith.constant 0 : i32
    %c0_i32_0 = arith.constant 0 : i32
    %c0_i32_1 = arith.constant 0 : i32
    return %arg0, %arg1, %c0_i32, %c0_i32_0 : i32, i32, i32, i32
  }
  func.func @transform_8(%arg0: i32, %arg1: i32, %arg2: i32) -> (i32, i32, i32, i32) {
    %c0_i32 = arith.constant 0 : i32
    %c0_i32_0 = arith.constant 0 : i32
    %c0_i32_1 = arith.constant 0 : i32
    return %arg0, %arg1, %c0_i32, %c0_i32_0 : i32, i32, i32, i32
  }
}

</mosaic_0001>

<bundles_post_ra>
// kernel: tpu_custom_call.1
= control target key start
LH: loop header
LB: loop body
LE: loop exit
PB: predicated region body
PF: predicated region fallthrough
CT: control target
= control target key end

     0   :  { %s1574_s0 = inlined_call_operand.hbm [shape: f32[2,4,256], index: 0, kind: input, shape index: {}]   ;;  %s1575_s1 = inlined_call_operand.hbm [shape: f32[2,4,256], index: 1, kind: input, shape index: {}]   ;;  %s1576_s2 = inlined_call_operand.vmem [shape: f32[4,4], index: 2, kind: input, shape index: {}]   ;;  %s1577_s3 = inlined_call_operand.vmem [shape: f32[4,4], index: 3, kind: input, shape index: {}]   ;;  %s1578_s4 = inlined_call_operand.vmem [shape: f32[4,1], index: 4, kind: input, shape index: {}]   ;;  %s1579_s5 = inlined_call_operand.vmem [shape: f32[4,1], index: 5, kind: input, shape index: {}]   ;;  %s1580_s6 = inlined_call_operand.hbm [shape: f32[2,1,4,4], index: 6, kind: output, shape index: {0}]   ;;  %s1581_s7 = inlined_call_operand.vmem [shape: f32[2,1,4,1], index: 7, kind: output, shape index: {1}]   ;;  %s1582_s8 = inlined_call_operand.vmem [shape: f32[2,1,4,1], index: 8, kind: output, shape index: {2}]  }
   0x1   :  { %1590 = sst [smem:[#allocation19_spill]] %s1574_s0 }
   0x2   :  { %1591 = sst [smem:[#allocation20_spill]] %s1580_s6 }
   0x3   :  { %14 = vsyncpa [#allocation3], 0 }
   0x4   :  { %16 = vsyncpa [#allocation3 + $0x1], 0 }
   0x5   :  { %17 = vsyncpa [#allocation6], 0 }
   0x6   :  { %19 = vsyncpa [#allocation6 + $0x1], 0 }
   0x7   :  { %20 = vsyncpa [#allocation4], 0 }
   0x8   :  { %22 = vsyncpa [#allocation4 + $0x1], 0  ;;  %s1313_s27 = smov 0   ;;  %s1315_s28 = smov 0  }
   0x9   :  { %s1317_s29 = smov 0   ;;  %s1319_s30 = smov 0  }
   0xa   :  { %s1321_s9 = smov 0   ;;  %s1323_s10 = smov 0  }
   0xb   :  { %s1325_s11 = smov 0   ;;  %s1327_s12 = smov 0  }
   0xc   :  { %s1329_s13 = smov 0   ;;  %s1331_s14 = smov 0  }
   0xd   :  { %s1333_s15 = smov 0  }
   0xe LB: > { %1592 = sst [smem:[#allocation11_spill]] %s1227_s29  ;;  %s921_s16 = sadd.s32 4294967295, %s1259_s15   ;;  %s1259_s15 = sphi %s1333_s15, %s28_s15   ;;  %s1255_s14 = sphi %s1331_s14, %s1621_s14   ;;  %s1251_s13 = sphi %s1329_s13, %s1614_s13   ;;  %s1247_s12 = sphi %s1327_s12, %s1613_s12   ;;  %s1243_s11 = sphi %s1325_s11, %s1612_s11   ;;  %s1239_s10 = sphi %s1323_s10, %s1620_s10   ;;  %s1235_s9 = sphi %s1321_s9, %s1619_s9   ;;  %s1231_s30 = sphi %s1319_s30, %s1618_s30   ;;  %s1227_s29 = sphi %s1317_s29, %s1610_s29   ;;  %s1223_s28 = sphi %s1315_s28, %s1617_s28   ;;  %s1219_s27 = sphi %s1313_s27, %s1616_s27  }
   0xf   : > { %1593 = sst [smem:[#allocation12_spill]] %s1251_s13  ;;  %s922_s17 = sadd.s32 4294967294, %s1259_s15  }
  0x10   : > { %1594 = sst [smem:[#allocation13_spill]] %s1255_s14  ;;  %s40_s18 = sadd.s32 1, %s1251_s13 }
  0x11   : > { %s47_s19 = sadd.s32 1, %s1255_s14  ;;  %p41_p0 = scmp.ge.s32.totalorder %s40_s18, 2 }
  0x12   : > { %s60_s20 = sadd.s32 1, %s1239_s10  ;;  %p67_p1 = scmp.ne.s32.totalorder %s1239_s10, %s1235_s9 }
  0x13   : > { %p68_p2 = scmp.eq.s32.totalorder %s1259_s15, 0  ;;  %s1623_s18 = smov (%p41_p0, %s40_s18), 0 }
  0x14   : > { %1595 = sst [smem:[#allocation14_spill]] %s1623_s18  ;;  %s1625_s19 = smov (!%p41_p0, %s47_s19), %s1255_s14 }
  0x15   : > { %s56_s21 = ssub.s32 %s1251_s13, %s1623_s18  ;;  %p1379_p3 = por %p68_p2, %p67_p1 }
  0x16   : > { %p49_p4 = scmp.ge.s32.totalorder %s1625_s19, 2  ;;  %p73_p5 = scmp.ne.s32.totalorder %s1235_s9, %s1231_s30 }
  0x17   : > { %p74_p6 = scmp.eq.s32.totalorder %s921_s16, 0  ;;  %s204_s23 = sadd.s32 1, %s1227_s29 }
  0x18   : > { %s1627_s19 = smov (%p49_p4, %s1625_s19), 0  ;;  %p214_p8 = scmp.ne.s32.totalorder %s1227_s29, %s1223_s28 }
  0x19   : > { %1597 = sst [smem:[#allocation15_spill]] %s1627_s19  ;;  %p1387_p7 = por %p74_p6, %p73_p5 }
  0x1a   : > { %s55_s25 = ssub.s32 %s1255_s14, %s1627_s19  ;;  %p215_p9 = scmp.eq.s32.totalorder %s921_s16, 3 }
  0x1b   : > { %s57_s26 = sor.u32 %s56_s21, %s55_s25  ;;  %p202_p10 = scmp.eq.s32.totalorder %s55_s25, 0 }
  0x1c   : > { %p58_p11 = scmp.eq.s32.totalorder %s57_s26, 0  ;;  %p1395_p12 = por %p215_p9, %p214_p8 }
  0x1d   : > { %s1400_s18 = scalar_select %p202_p10, %s1227_s29, %s204_s23  }
  0x1e   : > { %s1403_s6 = scalar_select %p58_p11, %s1239_s10, %s60_s20  }
  0x1f   : > { %1600 = sst [smem:[#allocation16_spill]] %s1400_s18  ;;  %p220_p13 = scmp.ne.s32.totalorder %s1223_s28, %s1219_s27 }
  0x20   : > { %1601 = sst [smem:[#allocation17_spill]] %s1403_s6  ;;  %p221_p0 = scmp.eq.s32.totalorder %s922_s17, 3 }
  0x21   : > { %p984_p1 = scmp.lt.s32.totalorder %s1259_s15, 4  ;;  %s1413_s16 = sand.u32 1, %s1239_s10  }
  0x22   : > { %p1408_p2 = por %p221_p0, %p220_p13  ;;  %s925_s21 = sshll.u32 %s1413_s16, 2 }
  0x23   : > { %s926_s25 = sshll.u32 %s1255_s14, 1  ;;  %s313_s26 = scalar_lea.vmem [#allocation2], %s925_s21 }
  0x24   : > { %s1602_s19 = scalar_select %p1408_p2, 1, 0 }
  0x25   : > { %s320_s23 = sadd.s32 %s1251_s13, %s926_s25  ;;  %s324_s20 = sshll.u32 %s313_s26, 4  ;;  %s325_s20 = int_to_ptr.vmem [resolvable:$true] %s324_s20 }
  0x26   : > { %1603 = sst [smem:[#allocation18_spill]] %s1602_s19  ;;  %s927_s6 = sshll.u32 %s320_s23, 6 }
  0x27   : > { %s1604_s0 = sld [smem:[#allocation19_spill]]  ;;  %p1425_p4 = pnand %p984_p1, %p1379_p3 }
  0x28   : > { %p931_p5 = scmp.ge.s32.totalorder %s1259_s15, 1  ;;  %p351_p6 = scmp.lt.s32.totalorder %s1259_s15, 5 }
  0x29   : > { %s310_s14 = scalar_lea.sflag [#allocation3], %s1413_s16  ;;  %p1081_p8 = pneg %p1425_p4 }
  0x2a   : > { %s1092_s25 = scalar_lea.vmem %s325_s20, 64  ;;  %s1261_s18 = smov [#allocation2]  }
  0x2b   : > { %p1093_p9 = scmp.ne.s32.totalorder %s325_s20, %s1092_s25  ;;  %s1097_s23 = sshll.u32 %s1261_s18, 4  ;;  %s1098_s23 = int_to_ptr.vmem [resolvable:$false] %s1097_s23 }
  0x2c   : > { %s1099_s22 = scalar_lea.vmem %s1098_s23, 128  ;;  %p1100_p3 = scmp.lt.s32.totalorder %s325_s20, %s1098_s23 }
  0x2d   : > { %s322_s29 = scalar_lea.hbm %s1604_s0, %s927_s6  ;;  %p1095_p10 = pnand %p1093_p9, %p1081_p8 }
  0x2e   : > { %p1101_p13 = scmp.lt.s32.totalorder %s1099_s22, %s1092_s25 }
  0x2f   : > { %p1096_p11 = pneg %p1095_p10 }
  0x30   : > { %p1102_p0 = por %p1101_p13, %p1100_p3 }
  0x32   : > { %p1103_p1 = pnand %p1102_p0, %p1096_p11 }
  0x34   : > { %1106 = shalt.err (!%p1103_p1)
}
  0x35   : > { %976 = dma.hbm_to_vmem [thread:$0]  (!%p1425_p4), %s322_s29, 64, %s325_s20, %s310_s14  }
  0x36   : > { %p1443_p9 = pnand %p931_p5, %p351_p6  ;;  %s344_s25 = scalar_lea.hbm %s1575_s1, %s927_s6 }
  0x37   : > { %s335_s23 = scalar_lea.vmem [#allocation5], %s925_s21  ;;  %s332_s0 = scalar_lea.sflag [#allocation6], %s1413_s16 }
  0x38   : > { %s346_s22 = sshll.u32 %s335_s23, 4  ;;  %s1262_s29 = smov [#allocation5]   ;;  %s347_s22 = int_to_ptr.vmem [resolvable:$true] %s346_s22 }
  0x39   : > { %s1120_s13 = scalar_lea.vmem %s347_s22, 64  ;;  %s1125_s14 = sshll.u32 %s1262_s29, 4  ;;  %s1126_s14 = int_to_ptr.vmem [resolvable:$false] %s1125_s14 }
  0x3a   : > { %p1121_p10 = scmp.ne.s32.totalorder %s347_s22, %s1120_s13  ;;  %s1127_s20 = scalar_lea.vmem %s1126_s14, 128 }
  0x3b   : > { %p1128_p5 = scmp.lt.s32.totalorder %s347_s22, %s1126_s14  ;;  %p1129_p6 = scmp.lt.s32.totalorder %s1127_s20, %s1120_s13 }
  0x3c   : > { %p1123_p11 = pnand %p1121_p10, %p1081_p8 }
  0x3d   : > { %p1130_p13 = por %p1129_p6, %p1128_p5 }
  0x3e   : > { %p1124_p3 = pneg %p1123_p11 }
  0x40   : > { %p1131_p0 = pnand %p1130_p13, %p1124_p3 }
  0x42   : > { %1134 = shalt.err (!%p1131_p0)
}
  0x43   : > { %979 = dma.hbm_to_vmem [thread:$0]  (!%p1425_p4), %s344_s25, 64, %s347_s22, %s332_s0  }
  0x44   : > { %355 = sbr.rel (%p1443_p9) target bundleno = 497 (0x1f1), region = 44  ;;  %s357_s6 = sand.u32 (!%p1443_p9), 1, %s1235_s9  }
  0x45   : > { %s932_s16 = sshll.u32 (!%p1443_p9), %s357_s6, 2  ;;  %s358_s21 = scalar_lea.sflag (!%p1443_p9), [#allocation3], %s357_s6 }
  0x46   : > { %s361_s17 = scalar_lea.vmem (!%p1443_p9), [#allocation2], %s932_s16 }
  0x49   : > { %1206 = dma.done.wait (%p1387_p7), %s358_s21, 64  }
  0x4a   : > { %1208 = vsyncadd (%p1387_p7), %s358_s21, 4294967232  ;;  %s367_s13 = scalar_lea.sflag [#allocation6], %s357_s6  ;;  %s370_s18 = scalar_lea.vmem [#allocation5], %s932_s16 }
  0x4b   : > { %1210 = dma.done.wait (%p1387_p7), %s367_s13, 64  }
  0x4c   : > { %1212 = vsyncadd (%p1387_p7), %s367_s13, 4294967232  ;;  %s401_s0 = sand.u32 1, %s1223_s28   ;;  %p426_p4 = scmp.lt.s32.totalorder %s1247_s12, 1 }
  0x4d   : > { %s934_s19 = sshll.u32 %s401_s0, 2  ;;  %p937_p7 = scmp.ne.s32.totalorder %s1243_s11, 0 }
  0x4e   : > { %s427_s26 = scalar_select %p426_p4, %s1247_s12, 1 }
  0x4f   : > { %s1484_s6 = scalar_lea.vmem [#allocation7], %s934_s19  ;;  %443 = sbr.rel (%p937_p7) target bundleno = 87 (0x57), region = 56 }
  0x50   : > { %s935_s25 = sshll.u32 %s427_s26, 2 }
  0x51   : > { %s1477_s29 = scalar_lea.vmem %s1581_s7, %s935_s25  ;;  %s1482_s24 = scalar_lea.vmem %s1582_s8, %s935_s25 }
  0x54   : > { %vm444_vm0 = vcmask 27648   ;;  %vm446_vm1 = vcmask 3072   ;;  %v1263_v0 = vmov 0.0  }
  0x55   : > { %445 = vst.msk [vmem:[%s1484_s6] sm:$0xf] %vm444_vm0, %v1263_v0 }
  0x56   : > { %447 = vst.msk [vmem:[%s1477_s29] sm:$0xf] %vm446_vm1, %v1263_v0  ;;  %448 = vst.msk [vmem:[%s1482_s24] sm:$0xf] %vm446_vm1, %v1263_v0 }
  0x57 PF: > { %v450_v1 = vld [vmem:[%s370_s18] sm:$0xf]  ;;  %vm462_vm2 = vcmask 1043456   ;;  %vm458_vm3 = vcmask 31744   ;;  %v1264_v2 = vmov 0.0   ;;  %vm1265_vm4 = vmmov 0  }
  0x58   : > { %952 = vmatprep.subr.mxu0 %v1264_v2  ;;  %957 = vmatprep.subr.mxu1 %v1264_v2  ;;  %v449_v3 = vld [vmem:[%s361_s17] sm:$0xf]  ;;  %v1266_v7 = vmov 0   ;;  %vm625_vm5 = vcmask 3072   ;;  %s943_s25 = sshll.u32 %s1247_s12, 6  ;;  %s737_s23 = sshll.u32 %s1484_s6, 4  ;;  %s738_s23 = int_to_ptr.vmem [resolvable:$true] %s737_s23 }
  0x59   : > { %v451_v4 = vld [vmem:[%s1576_s2] sm:$0xf]  ;;  %953 = vmatpush3.msk.msra.mxu0 %vm462_vm2, %v450_v1  ;;  %954 = vmatprep.mubr.msk.f32.mxu0 %vm1265_vm4, %v1264_v2  ;;  %vm706_vm6 = vcmask 27648   ;;  %s1607_s20 = sld [smem:[#allocation20_spill]]  ;;  %s1135_s11 = scalar_lea.vmem %s738_s23, 64 }
  0x5a   : > { %v536_v5 = vld [vmem:[%s1577_s3] sm:$0xf]  ;;  %958 = vmatpush3.msk.msra.mxu1 %vm462_vm2, %v449_v3  ;;  %959 = vmatprep.mubr.msk.f32.mxu1 %vm1265_vm4, %v1264_v2  ;;  %p1136_p8 = scmp.ne.s32.totalorder %s738_s23, %s1135_s11  ;;  %s1267_s12 = smov [#allocation7]  }
  0x5b   : > { %v537_v6 = vld [vmem:[%s1579_s5] sm:$0xf]  ;;  %955 = vmatmul.mubr.msk.f32.vlgmr.msra.gmra.mxu0 %vm458_vm3, %v451_v4  ;;  %960 = vmatmul.mubr.msk.f32.vlgmr.msra.gmra.mxu1 %vm458_vm3, %v536_v5 }
  0x5c   : > { %1078 = vset.pattern.permute.xlu0 %v1266_v7  ;;  %962 = vmatprep.subr.mxu0 %v1264_v2  ;;  %v452_v8 = vld [vmem:[%s1578_s4] sm:$0xf]  ;;  %v634_v27 = vld [vmem:[%s1484_s6] sm:$0xf]  ;;  %p1137_p1 = pnand %p1136_p8, %p1395_p12 }
  0x5d   : > { %540 = vperm.xlu0 %1078, %v537_v6   ;;  %964 = vmatprep.mubr.msk.f32.mxu0 %vm1265_vm4, %v1264_v2  ;;  %v619_v21 = vld [vmem:[%s1477_s29] sm:$0xf] }
  0x5e   : > { %v627_v24 = vld [vmem:[%s1482_s24] sm:$0xf]  ;;  %p1138_p9 = pneg %p1137_p1 }
  0x5f   : > { %s1516_s16 = scalar_lea.hbm %s1607_s20, %s943_s25 }
  0x61   : > { %455 = vperm.xlu0 %1078, %v452_v8  }
  0xd8   : > { %v541_v9 = vpop.permute.xlu0 %540 }
  0xdc   : > { %v456_v10 = vpop.permute.xlu0 %455 }
 0x11b   : > { %v532_v11 = vpop.f32.mrf.mxu0  ;;  %v615_v12 = vpop.f32.mrf.mxu1 }
 0x11c   : > { %v533_v13 = vadd.f32 %v532_v11, %v456_v10  ;;  %v616_v14 = vadd.f32 %v615_v12, %v541_v9 }
 0x11d   : > { %v961_v15 = vpop.f32.mrf.mxu1  ;;  %v956_v16 = vpop.f32.mrf.mxu0 }
 0x11e   : > { %963 = vmatpush3.xpose.msra.mxu0 %v616_v14  ;;  %v620_v17 = vmul.f32 %v533_v13, %v533_v13  ;;  %v628_v19 = vmul.f32 %v616_v14, %v616_v14 }
 0x120   : > { %v621_v18 = vsel %vm462_vm2, %v620_v17, 0.0  ;;  %v629_v20 = vsel %vm462_vm2, %v628_v19, 0.0 }
 0x121   : > { %622 = vadd.xlane.f32.xlu1 %v621_v18  ;;  %965 = vmatmul.mubr.f32.vlgmr.msra.gmra.mxu0 %v533_v13 }
 0x125   : > { %630 = vadd.xlane.f32.xlu1 %v629_v20 }
 0x1aa   : > { %v623_v22 = vpop.xlane.xlu1 %622 }
 0x1ab   : > { %v624_v23 = vadd.f32 %v623_v22, %v619_v21 }
 0x1ad   : > { %626 = vst.msk [vmem:[%s1477_s29] sm:$0xf] %vm625_vm5, %v624_v23  ;;  %s709_s29 = scalar_lea.sflag [#allocation4], %s401_s0 }
 0x1ae   : > { %v631_v25 = vpop.xlane.xlu1 %630 }
 0x1af   : > { %v632_v26 = vadd.f32 %v631_v25, %v627_v24 }
 0x1b1   : > { %633 = vst.msk [vmem:[%s1482_s24] sm:$0xf] %vm625_vm5, %v632_v26  ;;  %s1139_s24 = sshll.u32 %s1267_s12, 4  ;;  %s1140_s24 = int_to_ptr.vmem [resolvable:$false] %s1139_s24 }
 0x1b2   : > { %s1141_s21 = scalar_lea.vmem %s1140_s24, 128  ;;  %p1142_p10 = scmp.lt.s32.totalorder %s738_s23, %s1140_s24 }
 0x1b3   : > { %p1143_p11 = scmp.lt.s32.totalorder %s1141_s21, %s1135_s11 }
 0x1b5   : > { %p1144_p3 = por %p1143_p11, %p1142_p10 }
 0x1b7   : > { %p1145_p5 = pnand %p1144_p3, %p1138_p9 }
 0x1e1   : > { %v701_v28 = vpop.f32.mrf.mxu0 }
 0x1e2   : > { %v705_v29 = vadd.f32 %v701_v28, %v634_v27 }
 0x1e3   : > { %v966_v30 = vpop.f32.mrf.mxu0 }
 0x1e4   : > { %707 = vst.msk [vmem:[%s1484_s6] sm:$0xf] %vm706_vm6, %v705_v29 }
 0x1e5   : > { %1148 = shalt.err (!%p1145_p5)
}
 0x1e6   : > { %s1149_s6 = scalar_lea.hbm %s1516_s16, 64  ;;  %s1153_s18 = scalar_lea.hbm %s1607_s20, 128 }
 0x1e7   : > { %p1150_p6 = scmp.ne.s32.totalorder %s1516_s16, %s1149_s6  ;;  %p1154_p4 = scmp.lt.s32.totalorder %s1516_s16, %s1607_s20 }
 0x1e8   : > { %p1155_p7 = scmp.lt.s32.totalorder %s1153_s18, %s1149_s6 }
 0x1e9   : > { %p1151_p13 = pnand %p1150_p6, %p1395_p12 }
 0x1ea   : > { %p1156_p8 = por %p1155_p7, %p1154_p4 }
 0x1eb   : > { %p1152_p0 = pneg %p1151_p13 }
 0x1ed   : > { %p1157_p1 = pnand %p1156_p8, %p1152_p0 }
 0x1ef   : > { %1160 = shalt.err (!%p1157_p1)
}
 0x1f0   : > { %971 = dma.vmem_to_hbm [thread:$0]  (%p1395_p12), %s738_s23, 64, %s1516_s16, %s709_s29  }
 0x1f1 PF: > { %p985_p9 = scmp.ge.s32.totalorder %s1259_s15, 2  ;;  %s755_s25 = sand.u32 1, %s1219_s27  }
 0x1f2   : > { %s756_s22 = scalar_lea.sflag [#allocation4], %s755_s25 }
 0x1f3   : > { %p981_p10 = pnand %p985_p9, %p1408_p2 }
 0x1f5   : > { %p982_p11 = pneg %p981_p10 }
 0x1f7   : > { %1214 = dma.done.wait (%p982_p11), %s756_s22, 64  }
 0x1f8   : > { %1216 = vsyncadd (%p982_p11), %s756_s22, 4294967232  ;;  %s28_s15 = sadd.s32 1, %s1259_s15   ;;  %s1609_s14 = sld [smem:[#allocation11_spill]] }
 0x1f9   : > { %p25_p3 = scmp.ge.s32.totalorder %s28_s15, 6   ;;  %s1610_s29 = sld [smem:[#allocation16_spill]] }
 0x1fa   : > { %s1611_s23 = sld [smem:[#allocation17_spill]]  ;;  %s1616_s27 = smov %s1223_s28 }
 0x1fb   : > { %s1612_s11 = sld [smem:[#allocation12_spill]]  ;;  %s1618_s30 = smov %s1235_s9 }
 0x1fc   : > { %s1613_s12 = sld [smem:[#allocation13_spill]]  ;;  %s1619_s9 = smov %s1239_s10 }
 0x1fd   : > { %s1614_s13 = sld [smem:[#allocation14_spill]] }
 0x1fe   : > { %s1615_s16 = sld [smem:[#allocation15_spill]]  ;;  %s1617_s28 = smov %s1609_s14 }
 0x200   : > { %s1620_s10 = smov %s1611_s23  ;;  %27 = sbr.rel (!%p25_p3) target bundleno = 14 (0xe), region = 130 }
 0x204   : > { %s1621_s14 = smov %s1615_s16 }
 0x205   :  { %781 = vsyncpa [#allocation3], 1 }
 0x206   :  { %783 = vsyncpa [#allocation3 + $0x1], 1 }
 0x207   :  { %784 = vsyncpa [#allocation6], 1 }
 0x208   :  { %786 = vsyncpa [#allocation6 + $0x1], 1 }
 0x209   :  { %787 = vsyncpa [#allocation4], 1 }
 0x20a   :  { %789 = vsyncpa [#allocation4 + $0x1], 1 }

</bundles_post_ra>
